<compile_context>
chip_gen: v7x
topology: tpu7x:2x2x1
jax: 0.10.0
libtpu: 0.0.40
codegen_flags: <defaults>
</compile_context>

<pallas_src>
import jax
import jax.numpy as jnp
from jax.experimental import pallas as pl
from jax.experimental.pallas import tpu as pltpu


def _round_up(x, m):
    return ((x + m - 1) // m) * m


def _two_mlp_head_kernel(x_ref, w6_ref, b6_ref, w7_ref, b7_ref, o_ref):
    """One row tile: out = relu(relu(x @ w6 + b6) @ w7 + b7)."""
    # fc6: full-D reduction in a single MXU pass against the VMEM-resident w6.
    # The bf16 cast of the x tile runs on the VPU and hides under the MXU.
    x_tile = x_ref[...].astype(w6_ref.dtype)
    h = jnp.dot(x_tile, w6_ref[...], preferred_element_type=jnp.float32)
    h = jnp.maximum(h + b6_ref[...], 0.0)                    # bias6 + ReLU in f32
    # fc7 against the VMEM-resident (R, R) weight.
    h2 = jnp.dot(h.astype(w7_ref.dtype), w7_ref[...],
                 preferred_element_type=jnp.float32)
    o_ref[...] = jnp.maximum(h2 + b7_ref[...], 0.0).astype(o_ref.dtype)


def _vmem_capacity_bytes():
    try:
        return int(pltpu.get_tpu_info().vmem_capacity_bytes)
    except Exception:                                  # noqa: BLE001
        return 64 * 1024 * 1024                        # conservative (v7x) fallback


def two_mlp_head(x, w6, b6, w7, b7, *, tm=None, compute_dtype=jnp.bfloat16):
    """TwoMLPHead forward. x: (N, ...); w6: (D, R); b6: (R,); w7: (R, R); b7: (R,)."""
    n = x.shape[0]
    d = 1
    for s in x.shape[1:]:
        d *= s
    r = w6.shape[1]
    assert w6.shape == (d, r) and w7.shape == (r, r)
    assert b6.shape == (r,) and b7.shape == (r,)

    # flatten(start_dim=1): metadata-only reshape; x itself is handed to the
    # kernel in its original dtype, un-padded (no extra HBM pass).
    x2d = x.reshape(n, d)

    # One-time weight/bias prep: weights to bf16 (so resident w6 fits v7x
    # VMEM), biases kept in f32 for the epilogue math.
    w6_c = w6.astype(compute_dtype)
    w7_c = w7.astype(compute_dtype)
    b6_2d = b6.astype(jnp.float32).reshape(1, r)
    b7_2d = b7.astype(jnp.float32).reshape(1, r)

    out_dtype = x.dtype
    x_bytes = jnp.dtype(x2d.dtype).itemsize
    w_bytes = jnp.dtype(compute_dtype).itemsize
    out_bytes = jnp.dtype(out_dtype).itemsize

    # Generation-aware VMEM budget: ~102 MiB on v5e/v6e (128 MiB physical),
    # ~51 MiB on v7x (64 MiB physical); headroom for compiler-internal scratch.
    vmem_budget = int(_vmem_capacity_bytes() * 0.80)

    # Actual HBM traffic: x once, resident weights once, output once.
    cost = pl.CostEstimate(
        flops=2 * n * d * r + 2 * n * r * r,
        bytes_accessed=(n * d * x_bytes              # x streamed exactly once
                        + d * r * w_bytes            # resident w6, read once
                        + r * r * w_bytes            # resident w7
                        + 2 * r * 4                  # biases
                        + n * r * out_bytes),        # output written once
        transcendentals=0,
    )

    def _call(const_bufs):
        # const_bufs == 1: single-buffer constant-index inputs via
        # pipeline_mode=pl.Buffered(1); const_bufs == 2: default pipelining.
        def resident(shape):
            if const_bufs == 1:
                return pl.BlockSpec(shape, lambda i: (0,) * len(shape),
                                    pipeline_mode=pl.Buffered(1))
            return pl.BlockSpec(shape, lambda i: (0,) * len(shape))

        resident_bytes = const_bufs * (d * r * w_bytes        # w6
                                       + r * r * w_bytes      # w7
                                       + 2 * r * 4)           # b6, b7

        def vmem_for(tm_):
            return (resident_bytes
                    + 2 * tm_ * d * x_bytes        # double-buffered x tile
                    + 2 * tm_ * r * out_bytes      # double-buffered out tile
                    + 2 * tm_ * r * 4)             # f32 h / h2 intermediates

        # Largest power-of-two row tile that fits the budget; keep >= 2 row
        # tiles when N allows so v7x megacore ("parallel") sharding is used.
        tm_eff = 512 if tm is None else tm
        while tm_eff > 8 and vmem_for(tm_eff) > vmem_budget:
            tm_eff //= 2
        if n <= tm_eff:
            tm_eff = _round_up(pl.cdiv(n, 2), 8) if n >= 16 else n

        grid = (pl.cdiv(n, tm_eff),)

        return pl.pallas_call(
            _two_mlp_head_kernel,
            out_shape=jax.ShapeDtypeStruct((n, r), out_dtype),
            grid_spec=pltpu.PrefetchScalarGridSpec(
                num_scalar_prefetch=0,
                grid=grid,
                in_specs=[
                    pl.BlockSpec((tm_eff, d), lambda i: (i, 0)),  # x row tile (streamed)
                    resident((d, r)),                             # w6 (VMEM-resident)
                    resident((1, r)),                             # b6
                    resident((r, r)),                             # w7
                    resident((1, r)),                             # b7
                ],
                out_specs=pl.BlockSpec((tm_eff, r), lambda i: (i, 0)),
            ),
            compiler_params=pltpu.CompilerParams(
                dimension_semantics=("parallel",),
                vmem_limit_bytes=vmem_budget),
            cost_estimate=cost,
        )(x2d, w6_c, b6_2d, w7_c, b7_2d)

    # TODO(synk): if D*R ever grows beyond what can stay VMEM-resident, a
    # K-reduction grid axis would be needed; canonical Faster R-CNN sizes
    # (D=12544, R=1024 -> ~25.7 MiB bf16) fit on all generations.
    try:
        return _call(const_bufs=1)
    except Exception:                                  # noqa: BLE001
        # Pallas version without BlockSpec pipeline_mode / Buffered(1):
        # fall back to default double buffering of the resident inputs.
        return _call(const_bufs=2)


def _reference(x, w6, b6, w7, b7):
    x = x.reshape(x.shape[0], -1)
    x = jax.nn.relu(x @ w6 + b6)
    x = jax.nn.relu(x @ w7 + b7)
    return x


if __name__ == "__main__":
    # Small shapes consistent with the module: ROI features (N, C, H, W),
    # in_channels = C*H*W, representation_size = R.
    N, C, H, W = 8, 4, 16, 16
    D = C * H * W          # 1024
    R = 128                # representation_size

    key = jax.random.PRNGKey(0)
    kx, k6w, k6b, k7w, k7b = jax.random.split(key, 5)

    x = jax.random.normal(kx, (N, C, H, W), dtype=jnp.float32)
    # Deterministic synthetic parameters (nn.Linear(D, R), nn.Linear(R, R)),
    # stored (in_features, out_features).
    w6 = jax.random.normal(k6w, (D, R), dtype=jnp.float32) * 0.02
    b6 = jax.random.normal(k6b, (R,), dtype=jnp.float32) * 0.01
    w7 = jax.random.normal(k7w, (R, R), dtype=jnp.float32) * 0.02
    b7 = jax.random.normal(k7b, (R,), dtype=jnp.float32) * 0.01

    out = two_mlp_head(x, w6, b6, w7, b7)
    out = jax.block_until_ready(out)

    ref = _reference(x, w6, b6, w7, b7)
    assert out.shape == (N, R)
    # bf16 MXU inputs with f32 accumulation vs the f32 reference.
    assert jnp.allclose(out, ref, atol=2e-2, rtol=2e-2), "mismatch vs reference"

    print("KERNEL_OK")
</pallas_src>

<mosaic_0001>
module attributes {stable_mosaic.version = 11 : i64} {
  func.func @_two_mlp_head_kernel(%arg0: i32, %arg1: memref<8x1024xf32, #tpu.memory_space<vmem>>, %arg2: memref<1024x128xbf16, #tpu.memory_space<vmem>>, %arg3: memref<1x128xf32, #tpu.memory_space<vmem>>, %arg4: memref<128x128xbf16, #tpu.memory_space<vmem>>, %arg5: memref<1x128xf32, #tpu.memory_space<vmem>>, %arg6: memref<8x128xf32, #tpu.memory_space<vmem>>) attributes {dimension_semantics = [#tpu.dimension_semantics<parallel>], iteration_bounds = array<i64: 1>, scalar_prefetch = 0 : i64, scratch_operands = 0 : i64, tpu.core_type = #tpu.core_type<tc>, window_params = [{transform_indices = @transform_0, window_bounds = array<i64: 8, 1024>}, {pipeline_mode = #tpu.pipeline_mode<synchronous>, transform_indices = @transform_1, window_bounds = array<i64: 1024, 128>}, {pipeline_mode = #tpu.pipeline_mode<synchronous>, transform_indices = @transform_2, window_bounds = array<i64: 1, 128>}, {pipeline_mode = #tpu.pipeline_mode<synchronous>, transform_indices = @transform_3, window_bounds = array<i64: 128, 128>}, {pipeline_mode = #tpu.pipeline_mode<synchronous>, transform_indices = @transform_4, window_bounds = array<i64: 1, 128>}, {transform_indices = @transform_5, window_bounds = array<i64: 8, 128>}]} {
    %c0 = arith.constant 0 : index
    %c0_0 = arith.constant 0 : index
    %0 = vector.load %arg1[%c0, %c0_0] : memref<8x1024xf32, #tpu.memory_space<vmem>>, vector<8x1024xf32>
    %1 = arith.truncf %0 : vector<8x1024xf32> to vector<8x1024xbf16>
    %c0_1 = arith.constant 0 : index
    %c0_2 = arith.constant 0 : index
    %2 = vector.load %arg2[%c0_1, %c0_2] : memref<1024x128xbf16, #tpu.memory_space<vmem>>, vector<1024x128xbf16>
    %cst = arith.constant dense<0.000000e+00> : vector<8x128xf32>
    %3 = tpu.matmul %1, %2, %cst {dimension_numbers = #tpu.dot_dimension_numbers<[1], [0], [0], [1], [0, 0, 1, 1], [], []>} : vector<8x1024xbf16>, vector<1024x128xbf16>, vector<8x128xf32> -> vector<8x128xf32>
    %c0_3 = arith.constant 0 : index
    %c0_4 = arith.constant 0 : index
    %4 = vector.load %arg3[%c0_3, %c0_4] : memref<1x128xf32, #tpu.memory_space<vmem>>, vector<1x128xf32>
    %5 = vector.broadcast %4 : vector<1x128xf32> to vector<8x128xf32>
    %6 = arith.addf %3, %5 : vector<8x128xf32>
    %cst_5 = arith.constant 0.000000e+00 : f32
    %7 = vector.broadcast %cst_5 : f32 to vector<8x128xf32>
    %8 = arith.maximumf %6, %7 : vector<8x128xf32>
    %9 = arith.truncf %8 : vector<8x128xf32> to vector<8x128xbf16>
    %c0_6 = arith.constant 0 : index
    %c0_7 = arith.constant 0 : index
    %10 = vector.load %arg4[%c0_6, %c0_7] : memref<128x128xbf16, #tpu.memory_space<vmem>>, vector<128x128xbf16>
    %cst_8 = arith.constant dense<0.000000e+00> : vector<8x128xf32>
    %11 = tpu.matmul %9, %10, %cst_8 {dimension_numbers = #tpu.dot_dimension_numbers<[1], [0], [0], [1], [0, 0, 1, 1], [], []>} : vector<8x128xbf16>, vector<128x128xbf16>, vector<8x128xf32> -> vector<8x128xf32>
    %c0_9 = arith.constant 0 : index
    %c0_10 = arith.constant 0 : index
    %12 = vector.load %arg5[%c0_9, %c0_10] : memref<1x128xf32, #tpu.memory_space<vmem>>, vector<1x128xf32>
    %13 = vector.broadcast %12 : vector<1x128xf32> to vector<8x128xf32>
    %14 = arith.addf %11, %13 : vector<8x128xf32>
    %cst_11 = arith.constant 0.000000e+00 : f32
    %15 = vector.broadcast %cst_11 : f32 to vector<8x128xf32>
    %16 = arith.maximumf %14, %15 : vector<8x128xf32>
    %c0_12 = arith.constant 0 : index
    %c0_13 = arith.constant 0 : index
    %17 = vector.load %arg6[%c0_12, %c0_13] : memref<8x128xf32, #tpu.memory_space<vmem>>, vector<8x128xf32>
    tpu.vector_store %arg6[%c0_12, %c0_13], %16 {strides = array<i32>} : memref<8x128xf32, #tpu.memory_space<vmem>>, vector<8x128xf32>,
    return
  }
  func.func @transform_0(%arg0: i32) -> (i32, i32) {
    %c0_i32 = arith.constant 0 : i32
    %c0_i32_0 = arith.constant 0 : i32
    return %arg0, %c0_i32 : i32, i32
  }
  func.func @transform_1(%arg0: i32) -> (i32, i32) {
    %c0_i32 = arith.constant 0 : i32
    %c0_i32_0 = arith.constant 0 : i32
    %c0_i32_1 = arith.constant 0 : i32
    return %c0_i32, %c0_i32_0 : i32, i32
  }
  func.func @transform_2(%arg0: i32) -> (i32, i32) {
    %c0_i32 = arith.constant 0 : i32
    %c0_i32_0 = arith.constant 0 : i32
    %c0_i32_1 = arith.constant 0 : i32
    return %c0_i32, %c0_i32_0 : i32, i32
  }
  func.func @transform_3(%arg0: i32) -> (i32, i32) {
    %c0_i32 = arith.constant 0 : i32
    %c0_i32_0 = arith.constant 0 : i32
    %c0_i32_1 = arith.constant 0 : i32
    return %c0_i32, %c0_i32_0 : i32, i32
  }
  func.func @transform_4(%arg0: i32) -> (i32, i32) {
    %c0_i32 = arith.constant 0 : i32
    %c0_i32_0 = arith.constant 0 : i32
    %c0_i32_1 = arith.constant 0 : i32
    return %c0_i32, %c0_i32_0 : i32, i32
  }
  func.func @transform_5(%arg0: i32) -> (i32, i32) {
    %c0_i32 = arith.constant 0 : i32
    %c0_i32_0 = arith.constant 0 : i32
    return %arg0, %c0_i32 : i32, i32
  }
}

module attributes {stable_mosaic.version = 11 : i64} {
  func.func @_two_mlp_head_kernel(%arg0: i32, %arg1: memref<8x1024xf32, #tpu.memory_space<vmem>>, %arg2: memref<1024x128xbf16, #tpu.memory_space<vmem>>, %arg3: memref<1x128xf32, #tpu.memory_space<vmem>>, %arg4: memref<128x128xbf16, #tpu.memory_space<vmem>>, %arg5: memref<1x128xf32, #tpu.memory_space<vmem>>, %arg6: memref<8x128xf32, #tpu.memory_space<vmem>>) attributes {dimension_semantics = [#tpu.dimension_semantics<parallel>], iteration_bounds = array<i64: 1>, scalar_prefetch = 0 : i64, scratch_operands = 0 : i64, tpu.core_type = #tpu.core_type<tc>, window_params = [{transform_indices = @transform_0, window_bounds = array<i64: 8, 1024>}, {pipeline_mode = #tpu.pipeline_mode<synchronous>, transform_indices = @transform_1, window_bounds = array<i64: 1024, 128>}, {pipeline_mode = #tpu.pipeline_mode<synchronous>, transform_indices = @transform_2, window_bounds = array<i64: 1, 128>}, {pipeline_mode = #tpu.pipeline_mode<synchronous>, transform_indices = @transform_3, window_bounds = array<i64: 128, 128>}, {pipeline_mode = #tpu.pipeline_mode<synchronous>, transform_indices = @transform_4, window_bounds = array<i64: 1, 128>}, {transform_indices = @transform_5, window_bounds = array<i64: 8, 128>}]} {
    %c0 = arith.constant 0 : index
    %c0_0 = arith.constant 0 : index
    %0 = vector.load %arg1[%c0, %c0_0] : memref<8x1024xf32, #tpu.memory_space<vmem>>, vector<8x1024xf32>
    %1 = arith.truncf %0 : vector<8x1024xf32> to vector<8x1024xbf16>
    %c0_1 = arith.constant 0 : index
    %c0_2 = arith.constant 0 : index
    %2 = vector.load %arg2[%c0_1, %c0_2] : memref<1024x128xbf16, #tpu.memory_space<vmem>>, vector<1024x128xbf16>
    %cst = arith.constant dense<0.000000e+00> : vector<8x128xf32>
    %3 = tpu.matmul %1, %2, %cst {dimension_numbers = #tpu.dot_dimension_numbers<[1], [0], [0], [1], [0, 0, 1, 1], [], []>} : vector<8x1024xbf16>, vector<1024x128xbf16>, vector<8x128xf32> -> vector<8x128xf32>
    %c0_3 = arith.constant 0 : index
    %c0_4 = arith.constant 0 : index
    %4 = vector.load %arg3[%c0_3, %c0_4] : memref<1x128xf32, #tpu.memory_space<vmem>>, vector<1x128xf32>
    %5 = vector.broadcast %4 : vector<1x128xf32> to vector<8x128xf32>
    %6 = arith.addf %3, %5 : vector<8x128xf32>
    %cst_5 = arith.constant 0.000000e+00 : f32
    %7 = vector.broadcast %cst_5 : f32 to vector<8x128xf32>
    %8 = arith.maximumf %6, %7 : vector<8x128xf32>
    %9 = arith.truncf %8 : vector<8x128xf32> to vector<8x128xbf16>
    %c0_6 = arith.constant 0 : index
    %c0_7 = arith.constant 0 : index
    %10 = vector.load %arg4[%c0_6, %c0_7] : memref<128x128xbf16, #tpu.memory_space<vmem>>, vector<128x128xbf16>
    %cst_8 = arith.constant dense<0.000000e+00> : vector<8x128xf32>
    %11 = tpu.matmul %9, %10, %cst_8 {dimension_numbers = #tpu.dot_dimension_numbers<[1], [0], [0], [1], [0, 0, 1, 1], [], []>} : vector<8x128xbf16>, vector<128x128xbf16>, vector<8x128xf32> -> vector<8x128xf32>
    %c0_9 = arith.constant 0 : index
    %c0_10 = arith.constant 0 : index
    %12 = vector.load %arg5[%c0_9, %c0_10] : memref<1x128xf32, #tpu.memory_space<vmem>>, vector<1x128xf32>
    %13 = vector.broadcast %12 : vector<1x128xf32> to vector<8x128xf32>
    %14 = arith.addf %11, %13 : vector<8x128xf32>
    %cst_11 = arith.constant 0.000000e+00 : f32
    %15 = vector.broadcast %cst_11 : f32 to vector<8x128xf32>
    %16 = arith.maximumf %14, %15 : vector<8x128xf32>
    %c0_12 = arith.constant 0 : index
    %c0_13 = arith.constant 0 : index
    %17 = vector.load %arg6[%c0_12, %c0_13] : memref<8x128xf32, #tpu.memory_space<vmem>>, vector<8x128xf32>
    tpu.vector_store %arg6[%c0_12, %c0_13], %16 {strides = array<i32>} : memref<8x128xf32, #tpu.memory_space<vmem>>, vector<8x128xf32>,
    return
  }
  func.func @transform_0(%arg0: i32) -> (i32, i32) {
    %c0_i32 = arith.constant 0 : i32
    %c0_i32_0 = arith.constant 0 : i32
    return %arg0, %c0_i32 : i32, i32
  }
  func.func @transform_1(%arg0: i32) -> (i32, i32) {
    %c0_i32 = arith.constant 0 : i32
    %c0_i32_0 = arith.constant 0 : i32
    %c0_i32_1 = arith.constant 0 : i32
    return %c0_i32, %c0_i32_0 : i32, i32
  }
  func.func @transform_2(%arg0: i32) -> (i32, i32) {
    %c0_i32 = arith.constant 0 : i32
    %c0_i32_0 = arith.constant 0 : i32
    %c0_i32_1 = arith.constant 0 : i32
    return %c0_i32, %c0_i32_0 : i32, i32
  }
  func.func @transform_3(%arg0: i32) -> (i32, i32) {
    %c0_i32 = arith.constant 0 : i32
    %c0_i32_0 = arith.constant 0 : i32
    %c0_i32_1 = arith.constant 0 : i32
    return %c0_i32, %c0_i32_0 : i32, i32
  }
  func.func @transform_4(%arg0: i32) -> (i32, i32) {
    %c0_i32 = arith.constant 0 : i32
    %c0_i32_0 = arith.constant 0 : i32
    %c0_i32_1 = arith.constant 0 : i32
    return %c0_i32, %c0_i32_0 : i32, i32
  }
  func.func @transform_5(%arg0: i32) -> (i32, i32) {
    %c0_i32 = arith.constant 0 : i32
    %c0_i32_0 = arith.constant 0 : i32
    return %arg0, %c0_i32 : i32, i32
  }
}

</mosaic_0001>

<bundles_post_ra>
// kernel: tpu_custom_call.1
= control target key start
LH: loop header
LB: loop body
LE: loop exit
PB: predicated region body
PF: predicated region fallthrough
CT: control target
= control target key end

     0   :  { %10 = vsyncpa [#allocation3], 0  ;;  %s1350_s0 = inlined_call_operand.hbm [shape: f32[8,1024], index: 0, kind: input, shape index: {}]   ;;  %s1351_s1 = inlined_call_operand.hbm [shape: bf16[1024,128], index: 1, kind: input, shape index: {}]   ;;  %s1352_s2 = inlined_call_operand.vmem [shape: f32[1,128], index: 2, kind: input, shape index: {}]   ;;  %s1353_s3 = inlined_call_operand.hbm [shape: bf16[128,128], index: 3, kind: input, shape index: {}]   ;;  %s1354_s4 = inlined_call_operand.vmem [shape: f32[1,128], index: 4, kind: input, shape index: {}]   ;;  %s1355_s5 = inlined_call_operand.hbm [shape: f32[8,128], index: 5, kind: output, shape index: {}]  }
   0x1   :  { %11 = vsyncpa [#allocation6], 0 }
   0x2   :  { %12 = vsyncpa [#allocation4], 0  ;;  %s1252_s18 = smov [#allocation5]   ;;  %s1158_s22 = scalar_lea.hbm %s1351_s1, 8192 }
   0x3   :  { %s28_s19 = sshll.u32 %s1252_s18, 4  ;;  %p1159_p0 = scmp.ne.s32.totalorder %s1351_s1, %s1158_s22  ;;  %s29_s19 = int_to_ptr.vmem [resolvable:$true] %s28_s19 }
   0x4   :  { %p1162_p1 = scmp.lt.u32.totalorder %s1158_s22, %s1351_s1 }
   0x6   :  { %p1164_p2 = pnand %p1162_p1, %p1159_p0 }
   0x8   :  { %1167 = shalt.err (!%p1164_p2)
}
   0x9   :  { %s1168_s27 = scalar_lea.vmem %s29_s19, 8192  ;;  %p1173_p4 = scmp.lt.s32.totalorder %s29_s19, %s29_s19 }
   0xa   :  { %p1169_p3 = scmp.ne.s32.totalorder %s29_s19, %s1168_s27  ;;  %p1174_p5 = scmp.lt.s32.totalorder %s1168_s27, %s1168_s27 }
   0xc   :  { %p1175_p6 = por %p1174_p5, %p1173_p4 }
   0xe   :  { %p1176_p7 = pnand %p1175_p6, %p1169_p3 }
  0x10   :  { %1179 = shalt.err (!%p1176_p7)
}
  0x11   :  { %s1253_s28 = smov 64   ;;  %s1254_s29 = smov 4  }
  0x12   :  { %34 = dma.hbm_to_vmem [thread:$0]  %s1351_s1, 8192, %s29_s19, [#allocation6], %s1253_s28, %s1253_s28, %s1254_s29  }
  0x13   :  { %s1255_s7 = smov [#allocation2]   ;;  %s1256_s9 = smov [#allocation7]  }
  0x14   :  { %s19_s8 = sshll.u32 %s1255_s7, 4  ;;  %s42_s10 = sshll.u32 %s1256_s9, 4  ;;  %s20_s8 = int_to_ptr.vmem [resolvable:$true] %s19_s8  ;;  %s43_s10 = int_to_ptr.vmem [resolvable:$true] %s42_s10 }
  0x15   :  { %s1180_s13 = scalar_lea.hbm %s1350_s0, 1024 }
  0x16   :  { %p1181_p8 = scmp.ne.s32.totalorder %s1350_s0, %s1180_s13  ;;  %p1184_p9 = scmp.lt.u32.totalorder %s1180_s13, %s1350_s0 }
  0x18   :  { %p1186_p10 = pnand %p1184_p9, %p1181_p8 }
  0x1a   :  { %1189 = shalt.err (!%p1186_p10)
}
  0x1b   :  { %s1190_s1 = scalar_lea.vmem %s20_s8, 1024  ;;  %p1195_p12 = scmp.lt.s32.totalorder %s20_s8, %s20_s8 }
  0x1c   :  { %p1191_p11 = scmp.ne.s32.totalorder %s20_s8, %s1190_s1  ;;  %p1196_p13 = scmp.lt.s32.totalorder %s1190_s1, %s1190_s1 }
  0x1e   :  { %p1197_p0 = por %p1196_p13, %p1195_p12 }
  0x20   :  { %p1198_p1 = pnand %p1197_p0, %p1191_p11 }
  0x22   :  { %1201 = shalt.err (!%p1198_p1)
}
  0x23   :  { %22 = dma.hbm_to_vmem [thread:$0]  %s1350_s0, 1024, %s20_s8, [#allocation3]  }
  0x24   :  { %s1202_s22 = scalar_lea.hbm %s1353_s3, 1024 }
  0x25   :  { %p1203_p2 = scmp.ne.s32.totalorder %s1353_s3, %s1202_s22  ;;  %p1206_p3 = scmp.lt.u32.totalorder %s1202_s22, %s1353_s3 }
  0x27   :  { %p1208_p4 = pnand %p1206_p3, %p1203_p2 }
  0x29   :  { %1211 = shalt.err (!%p1208_p4)
}
  0x2a   :  { %s1212_s27 = scalar_lea.vmem %s43_s10, 1024  ;;  %p1217_p6 = scmp.lt.s32.totalorder %s43_s10, %s43_s10 }
  0x2b   :  { %p1213_p5 = scmp.ne.s32.totalorder %s43_s10, %s1212_s27  ;;  %p1218_p7 = scmp.lt.s32.totalorder %s1212_s27, %s1212_s27 }
  0x2d   :  { %p1219_p8 = por %p1218_p7, %p1217_p6 }
  0x2f   :  { %p1220_p9 = pnand %p1219_p8, %p1213_p5 }
  0x31   :  { %1223 = shalt.err (!%p1220_p9)
}
  0x32   :  { %48 = dma.hbm_to_vmem [thread:$0]  %s1353_s3, 1024, %s43_s10, [#allocation6], %s1253_s28, %s1253_s28, %s1254_s29  }
  0x33   :  { %1246 = dma.done.wait [#allocation3], 1024  }
  0x34   :  { %1247 = vsyncadd [#allocation3], 4294966272 }
  0x35   :  { %1248 = dma.done.wait [#allocation6], 9216  }
  0x36   :  { %1249 = vsyncadd [#allocation6], 4294958080  ;;  %v1086_v0 = vld [vmem:[#allocation5 + $0x40] sm:$0xff]   ;;  %v1090_v4 = vld [vmem:[#allocation5 + $0x48] sm:$0xff]   ;;  %vm1258_vm0 = vmmov 0   ;;  %s1259_s6 = smov [#allocation8]  }
  0x37   :  { %v1087_v1 = vld [vmem:[#allocation5 + $0xc0] sm:$0xff]   ;;  %961 = vmatprep.subr.bf16.mxu0 %v1086_v0  ;;  %v1091_v5 = vld [vmem:[#allocation5 + $0xc8] sm:$0xff]   ;;  %v1094_v8 = vld [vmem:[#allocation5 + $0x50] sm:$0xff]   ;;  %s877_s7 = sshll.u32 %s1259_s6, 4  ;;  %s878_s7 = int_to_ptr.vmem [resolvable:$true] %s877_s7 }
  0x38   :  { %v1088_v2 = vld [vmem:[#allocation5] sm:$0xff]   ;;  %983 = vmatprep.subr.bf16.mxu1 %v1087_v1  ;;  %v1092_v6 = vld [vmem:[#allocation5 + $0x8] sm:$0xff]   ;;  %v1095_v9 = vld [vmem:[#allocation5 + $0xd0] sm:$0xff]   ;;  %s1224_s8 = scalar_lea.vmem %s878_s7, 128  ;;  %p1229_p11 = scmp.lt.s32.totalorder %s878_s7, %s878_s7 }
  0x39   :  { %v1089_v3 = vld [vmem:[#allocation5 + $0x80] sm:$0xff]   ;;  %962 = vmatpush3.bf16.msra.mxu0 %v1088_v2  ;;  %v1093_v7 = vld [vmem:[#allocation5 + $0x88] sm:$0xff]   ;;  %v1096_v10 = vld [vmem:[#allocation5 + $0x10] sm:$0xff]   ;;  %p1225_p10 = scmp.ne.s32.totalorder %s878_s7, %s1224_s8  ;;  %p1230_p12 = scmp.lt.s32.totalorder %s1224_s8, %s1224_s8 }
  0x3a   :  { %984 = vmatpush3.bf16.msra.mxu1 %v1089_v3  ;;  %963 = vmatprep.subr.bf16.mxu0 %v1090_v4  ;;  %v1097_v11 = vld [vmem:[#allocation5 + $0x90] sm:$0xff]   ;;  %v1098_v12 = vld [vmem:[#allocation5 + $0x58] sm:$0xff]   ;;  %v1102_v16 = vld [vmem:[#allocation5 + $0x60] sm:$0xff]  }
  0x3b   :  { %985 = vmatprep.subr.bf16.mxu1 %v1091_v5  ;;  %v1099_v13 = vld [vmem:[#allocation5 + $0xd8] sm:$0xff]   ;;  %v1103_v17 = vld [vmem:[#allocation5 + $0xe0] sm:$0xff]   ;;  %v1106_v20 = vld [vmem:[#allocation5 + $0x68] sm:$0xff]   ;;  %p1231_p13 = por %p1230_p12, %p1229_p11 }
  0x3c   :  { %v1100_v14 = vld [vmem:[#allocation5 + $0x18] sm:$0xff]   ;;  %v1104_v18 = vld [vmem:[#allocation5 + $0x20] sm:$0xff]   ;;  %v1107_v21 = vld [vmem:[#allocation5 + $0xe8] sm:$0xff]  }
  0x3d   :  { %964 = vmatpush3.bf16.msra.mxu0 %v1092_v6  ;;  %v1101_v15 = vld [vmem:[#allocation5 + $0x98] sm:$0xff]   ;;  %v1105_v19 = vld [vmem:[#allocation5 + $0xa0] sm:$0xff]   ;;  %v1108_v22 = vld [vmem:[#allocation5 + $0x28] sm:$0xff]   ;;  %p1232_p0 = pnand %p1231_p13, %p1225_p10 }
  0x3e   :  { %986 = vmatpush3.bf16.msra.mxu1 %v1093_v7  ;;  %965 = vmatprep.subr.bf16.mxu0 %v1094_v8  ;;  %v1109_v23 = vld [vmem:[#allocation5 + $0xa8] sm:$0xff]   ;;  %v1110_v24 = vld [vmem:[#allocation5 + $0x70] sm:$0xff]   ;;  %v1114_v28 = vld [vmem:[#allocation5 + $0x78] sm:$0xff]  }
  0x3f   :  { %987 = vmatprep.subr.bf16.mxu1 %v1095_v9  ;;  %v1111_v25 = vld [vmem:[#allocation5 + $0xf0] sm:$0xff]   ;;  %v1115_v29 = vld [vmem:[#allocation5 + $0xf8] sm:$0xff]   ;;  %v62_v32 = vld [vmem:[#allocation2 + $0x8] sm:$0xff] }
  0x40   :  { %v1112_v26 = vld [vmem:[#allocation5 + $0x30] sm:$0xff]   ;;  %v1116_v30 = vld [vmem:[#allocation5 + $0x38] sm:$0xff]   ;;  %v61_v34 = vld [vmem:[#allocation2] sm:$0xff]  ;;  %v70_v35 = vpack.c.bf16 %v62_v32, %v62_v32 }
  0x41   :  { %966 = vmatpush3.bf16.msra.mxu0 %v1096_v10  ;;  %v1113_v27 = vld [vmem:[#allocation5 + $0xb0] sm:$0xff]   ;;  %v1117_v31 = vld [vmem:[#allocation5 + $0xb8] sm:$0xff]   ;;  %v69_v37 = vpack.c.bf16 %v61_v34, %v61_v34  ;;  %v1118_v40 = vld [vmem:[#allocation5 + $0x140] sm:$0xff]  }
  0x42   :  { %988 = vmatpush3.bf16.msra.mxu1 %v1097_v11  ;;  %967 = vmatprep.subr.bf16.mxu0 %v1098_v12  ;;  %v64_v33 = vld [vmem:[#allocation2 + $0x18] sm:$0xff]  ;;  %v63_v38 = vld [vmem:[#allocation2 + $0x10] sm:$0xff]  ;;  %v1119_v41 = vld [vmem:[#allocation5 + $0x1c0] sm:$0xff]  }
  0x43   :  { %989 = vmatprep.subr.bf16.mxu1 %v1099_v13  ;;  %v72_v36 = vpack.c.bf16 %v64_v33, %v64_v33  ;;  %v71_v39 = vpack.c.bf16 %v63_v38, %v63_v38  ;;  %628 = vmatprep.mubr.bf16.mxu0 %v70_v35  ;;  %v1120_v42 = vld [vmem:[#allocation5 + $0x100] sm:$0xff]   ;;  %v1122_v44 = vld [vmem:[#allocation5 + $0x148] sm:$0xff]   ;;  %v1126_v48 = vld [vmem:[#allocation5 + $0x150] sm:$0xff]  }
  0x44   :  { %v1121_v43 = vld [vmem:[#allocation5 + $0x180] sm:$0xff]   ;;  %v1123_v45 = vld [vmem:[#allocation5 + $0x1c8] sm:$0xff]   ;;  %v1127_v49 = vld [vmem:[#allocation5 + $0x1d0] sm:$0xff]  }
  0x45   :  { %968 = vmatpush3.bf16.msra.mxu0 %v1100_v14  ;;  %668 = vmatprep.mubr.bf16.mxu1 %v72_v36  ;;  %v1124_v46 = vld [vmem:[#allocation5 + $0x108] sm:$0xff]   ;;  %v1128_v50 = vld [vmem:[#allocation5 + $0x110] sm:$0xff]   ;;  %v1130_v52 = vld [vmem:[#allocation5 + $0x158] sm:$0xff]  }
  0x46   :  { %990 = vmatpush3.bf16.msra.mxu1 %v1101_v15  ;;  %969 = vmatprep.subr.bf16.mxu0 %v1102_v16  ;;  %v1125_v47 = vld [vmem:[#allocation5 + $0x188] sm:$0xff]   ;;  %v1129_v51 = vld [vmem:[#allocation5 + $0x190] sm:$0xff]   ;;  %v1131_v53 = vld [vmem:[#allocation5 + $0x1d8] sm:$0xff]  }
  0x47   :  { %991 = vmatprep.subr.bf16.mxu1 %v1103_v17  ;;  %v1132_v54 = vld [vmem:[#allocation5 + $0x118] sm:$0xff]   ;;  %v1134_v56 = vld [vmem:[#allocation5 + $0x160] sm:$0xff]   ;;  %v1138_v60 = vld [vmem:[#allocation5 + $0x168] sm:$0xff]   ;;  %v1257_v17 = vmov 0.0  }
  0x48   :  { %v1133_v55 = vld [vmem:[#allocation5 + $0x198] sm:$0xff]   ;;  %v1135_v57 = vld [vmem:[#allocation5 + $0x1e0] sm:$0xff]   ;;  %v1139_v61 = vld [vmem:[#allocation5 + $0x1e8] sm:$0xff]  }
  0x49   :  { %970 = vmatpush3.bf16.msra.mxu0 %v1104_v18  ;;  %v1136_v58 = vld [vmem:[#allocation5 + $0x120] sm:$0xff]   ;;  %v1140_v62 = vld [vmem:[#allocation5 + $0x128] sm:$0xff]   ;;  %v1142_v0 = vld [vmem:[#allocation5 + $0x170] sm:$0xff]  }
  0x4a   :  { %992 = vmatpush3.bf16.msra.mxu1 %v1105_v19  ;;  %971 = vmatprep.subr.bf16.mxu0 %v1106_v20  ;;  %v1137_v59 = vld [vmem:[#allocation5 + $0x1a0] sm:$0xff]   ;;  %v1141_v63 = vld [vmem:[#allocation5 + $0x1a8] sm:$0xff]   ;;  %v1143_v1 = vld [vmem:[#allocation5 + $0x1f0] sm:$0xff]  }
  0x4b   :  { %993 = vmatprep.subr.bf16.mxu1 %v1107_v21  ;;  %v1144_v2 = vld [vmem:[#allocation5 + $0x130] sm:$0xff]   ;;  %v1146_v4 = vld [vmem:[#allocation5 + $0x178] sm:$0xff]   ;;  %v66_v8 = vld [vmem:[#allocation2 + $0x28] sm:$0xff] }
  0x4c   :  { %v1145_v3 = vld [vmem:[#allocation5 + $0x1b0] sm:$0xff]   ;;  %v1147_v5 = vld [vmem:[#allocation5 + $0x1f8] sm:$0xff]   ;;  %v74_v10 = vpack.c.bf16 %v66_v8, %v66_v8  ;;  %v65_v12 = vld [vmem:[#allocation2 + $0x20] sm:$0xff] }
  0x4d   :  { %972 = vmatpush3.bf16.msra.mxu0 %v1108_v22  ;;  %v1148_v6 = vld [vmem:[#allocation5 + $0x138] sm:$0xff]   ;;  %v67_v13 = vld [vmem:[#allocation2 + $0x30] sm:$0xff]  ;;  %v73_v14 = vpack.c.bf16 %v65_v12, %v65_v12  ;;  %v1150_v16 = vld [vmem:[#allocation7] sm:$0xff]  }
  0x4e   :  { %994 = vmatpush3.bf16.msra.mxu1 %v1109_v23  ;;  %973 = vmatprep.subr.bf16.mxu0 %v1110_v24  ;;  %v1149_v7 = vld [vmem:[#allocation5 + $0x1b8] sm:$0xff]   ;;  %v75_v15 = vpack.c.bf16 %v67_v13, %v67_v13  ;;  %v1151_v18 = vld [vmem:[#allocation7 + $0x8] sm:$0xff]   ;;  %v1152_v19 = vld [vmem:[#allocation7 + $0x10] sm:$0xff]  }
  0x4f   :  { %995 = vmatprep.subr.bf16.mxu1 %v1111_v25  ;;  %v68_v9 = vld [vmem:[#allocation2 + $0x38] sm:$0xff]  ;;  %v1154_v21 = vld [vmem:[#allocation7 + $0x20] sm:$0xff]   ;;  %v1155_v22 = vld [vmem:[#allocation7 + $0x28] sm:$0xff]  }
  0x50   :  { %v76_v11 = vpack.c.bf16 %v68_v9, %v68_v9  ;;  %v1153_v20 = vld [vmem:[#allocation7 + $0x18] sm:$0xff]   ;;  %v1156_v23 = vld [vmem:[#allocation7 + $0x30] sm:$0xff]  }
  0x51   :  { %974 = vmatpush3.bf16.msra.mxu0 %v1112_v26  ;;  %v1157_v24 = vld [vmem:[#allocation7 + $0x38] sm:$0xff]  }
  0x52   :  { %996 = vmatpush3.bf16.msra.mxu1 %v1113_v27  ;;  %975 = vmatprep.subr.bf16.mxu0 %v1114_v28  ;;  %v887_v27 = vld [vmem:[%s1352_s2] ss:$0 sm:$0xff] }
  0x53   :  { %997 = vmatprep.subr.bf16.mxu1 %v1115_v29 }
  0x55   :  { %976 = vmatpush3.bf16.msra.mxu0 %v1116_v30 }
  0x56   :  { %998 = vmatpush3.bf16.msra.mxu1 %v1117_v31  ;;  %1005 = vmatprep.subr.bf16.mxu0 %v1118_v40 }
  0x57   :  { %1027 = vmatprep.subr.bf16.mxu1 %v1119_v41 }
  0x58   :  { %629 = vmatmul.mubr.bf16.vlgmr.msra.gmra.mrb[0].mxu0 %v69_v37 }
  0x59   :  { %669 = vmatmul.mubr.bf16.vlgmr.msra.gmra.mrb[0].mxu1 %v71_v39  ;;  %1006 = vmatpush3.bf16.msra.mxu0 %v1120_v42 }
  0x5a   :  { %1028 = vmatpush3.bf16.msra.mxu1 %v1121_v43  ;;  %1007 = vmatprep.subr.bf16.mxu0 %v1122_v44 }
  0x5b   :  { %1029 = vmatprep.subr.bf16.mxu1 %v1123_v45  ;;  %708 = vmatprep.mubr.bf16.mxu0 %v74_v10 }
  0x5c   :  { %748 = vmatprep.mubr.bf16.mxu1 %v76_v11 }
  0x5d   :  { %1008 = vmatpush3.bf16.msra.mxu0 %v1124_v46 }
  0x5e   :  { %1030 = vmatpush3.bf16.msra.mxu1 %v1125_v47  ;;  %1009 = vmatprep.subr.bf16.mxu0 %v1126_v48 }
  0x5f   :  { %1031 = vmatprep.subr.bf16.mxu1 %v1127_v49 }
  0x61   :  { %1010 = vmatpush3.bf16.msra.mxu0 %v1128_v50 }
  0x62   :  { %1032 = vmatpush3.bf16.msra.mxu1 %v1129_v51  ;;  %1011 = vmatprep.subr.bf16.mxu0 %v1130_v52  ;;  %v952_v52 = vld [vmem:[%s1354_s4] ss:$0 sm:$0xff] }
  0x63   :  { %1033 = vmatprep.subr.bf16.mxu1 %v1131_v53 }
  0x65   :  { %1012 = vmatpush3.bf16.msra.mxu0 %v1132_v54 }
  0x66   :  { %1034 = vmatpush3.bf16.msra.mxu1 %v1133_v55  ;;  %1013 = vmatprep.subr.bf16.mxu0 %v1134_v56 }
  0x67   :  { %1035 = vmatprep.subr.bf16.mxu1 %v1135_v57 }
  0x69   :  { %1014 = vmatpush3.bf16.msra.mxu0 %v1136_v58 }
  0x6a   :  { %1036 = vmatpush3.bf16.msra.mxu1 %v1137_v59  ;;  %1015 = vmatprep.subr.bf16.mxu0 %v1138_v60 }
  0x6b   :  { %1037 = vmatprep.subr.bf16.mxu1 %v1139_v61 }
  0x6d   :  { %1016 = vmatpush3.bf16.msra.mxu0 %v1140_v62 }
  0x6e   :  { %1038 = vmatpush3.bf16.msra.mxu1 %v1141_v63  ;;  %1017 = vmatprep.subr.bf16.mxu0 %v1142_v0 }
  0x6f   :  { %1039 = vmatprep.subr.bf16.mxu1 %v1143_v1 }
  0x71   :  { %1018 = vmatpush3.bf16.msra.mxu0 %v1144_v2 }
  0x72   :  { %1040 = vmatpush3.bf16.msra.mxu1 %v1145_v3  ;;  %1019 = vmatprep.subr.bf16.mxu0 %v1146_v4 }
  0x73   :  { %1041 = vmatprep.subr.bf16.mxu1 %v1147_v5 }
  0x75   :  { %1020 = vmatpush3.bf16.msra.mxu0 %v1148_v6 }
  0x76   :  { %1042 = vmatpush3.bf16.msra.mxu1 %v1149_v7  ;;  %1058 = vmatprep.subr.bf16.mxu0 %v1257_v17 }
  0x78   :  { %709 = vmatmul.mubr.bf16.vlgmr.msra.gmra.mrb[4].mxu0 %v73_v14 }
  0x79   :  { %749 = vmatmul.mubr.bf16.vlgmr.msra.gmra.mrb[4].mxu1 %v75_v15  ;;  %1059 = vmatpush3.bf16.msra.mxu0 %v1150_v16 }
  0x7a   :  { %1060 = vmatprep.subr.bf16.mxu0 %v1257_v17  ;;  %1074 = vmatprep.mubr.msk.bf16.mxu0 %vm1258_vm0, %v1257_v17 }
  0x7d   :  { %1061 = vmatpush3.bf16.msra.mxu0 %v1151_v18 }
  0x7e   :  { %1062 = vmatprep.subr.bf16.mxu0 %v1257_v17 }
  0x81   :  { %1063 = vmatpush3.bf16.msra.mxu0 %v1152_v19 }
  0x82   :  { %1064 = vmatprep.subr.bf16.mxu0 %v1257_v17 }
  0x85   :  { %1065 = vmatpush3.bf16.msra.mxu0 %v1153_v20 }
  0x86   :  { %1066 = vmatprep.subr.bf16.mxu0 %v1257_v17 }
  0x89   :  { %1067 = vmatpush3.bf16.msra.mxu0 %v1154_v21 }
  0x8a   :  { %1068 = vmatprep.subr.bf16.mxu0 %v1257_v17 }
  0x8d   :  { %1069 = vmatpush3.bf16.msra.mxu0 %v1155_v22 }
  0x8e   :  { %1070 = vmatprep.subr.bf16.mxu0 %v1257_v17 }
  0x91   :  { %1071 = vmatpush3.bf16.msra.mxu0 %v1156_v23 }
  0x92   :  { %1072 = vmatprep.subr.bf16.mxu0 %v1257_v17 }
  0x95   :  { %1073 = vmatpush3.bf16.msra.mxu0 %v1157_v24 }
 0x12b   :  { %v977_v25 = vpop.f32.mrb[0].mxu0 }
 0x12c   :  { %v999_v26 = vpop.f32.mrb[0].mxu1  ;;  %v978_v28 = vpop.f32.mrb[1].mxu0 }
 0x12d   :  { %v1000_v29 = vpop.f32.mrb[1].mxu1  ;;  %v979_v30 = vadd.f32 %v978_v28, %v977_v25  ;;  %v980_v32 = vpop.f32.mrb[2].mxu0 }
 0x12e   :  { %v1001_v31 = vadd.f32 %v1000_v29, %v999_v26  ;;  %v1002_v33 = vpop.f32.mrb[2].mxu1  ;;  %v981_v34 = vpop.f32.mrb[3].mxu0 }
 0x12f   :  { %v1003_v35 = vpop.f32.mrb[3].mxu1  ;;  %v631_v36 = vadd.f32 %v979_v30, %v887_v27 }
 0x131   :  { %v671_v37 = vadd.f32 %v1001_v31, %v631_v36 }
 0x14b   :  { %v1021_v38 = vpop.f32.mrb[4].mxu0 }
 0x14c   :  { %v1043_v39 = vpop.f32.mrb[4].mxu1  ;;  %v1022_v40 = vpop.f32.mrb[5].mxu0 }
 0x14d   :  { %v1023_v41 = vadd.f32 %v1022_v40, %v1021_v38  ;;  %v1044_v42 = vpop.f32.mrb[5].mxu1  ;;  %v1024_v43 = vpop.f32.mrb[6].mxu0 }
 0x14e   :  { %v1045_v44 = vadd.f32 %v1044_v42, %v1043_v39  ;;  %v1046_v45 = vpop.f32.mrb[6].mxu1  ;;  %v1025_v46 = vpop.f32.mrb[7].mxu0 }
 0x14f   :  { %v711_v47 = vadd.f32 %v1023_v41, %v671_v37  ;;  %v1047_v48 = vpop.f32.mrb[7].mxu1 }
 0x151   :  { %v751_v49 = vadd.f32 %v1045_v44, %v711_v47 }
 0x153   :  { %v756_v50 = vmax.f32 %v751_v49, 0.0 }
 0x155   :  { %v757_v51 = vpack.c.bf16 %v756_v50, %v756_v50 }
 0x157   :  { %1075 = vmatmul.mubr.bf16.vlgmr.msra.gmra.mrb[8].mxu0 %v757_v51 }
 0x22a   :  { %v863_v53 = vpop.f32.mrb[8].mxu0 }
 0x22b   :  { %v864_v54 = vadd.f32 %v952_v52, %v863_v53  ;;  %v1076_v55 = vpop.f32.mrb[9].mxu0 }
 0x22c   :  { %v866_v56 = vpop.f32.mrb[10].mxu0 }
 0x22d   :  { %v869_v57 = vmax.f32 %v864_v54, 0.0  ;;  %v1077_v58 = vpop.f32.mrb[11].mxu0 }
 0x22f   :  { %870 = vst [vmem:[#allocation8] sm:$0xff] %v869_v57 }
 0x230   :  { %1235 = shalt.err (!%p1232_p0)
}
 0x231   :  { %s1236_s4 = scalar_lea.hbm %s1355_s5, 128 }
 0x232   :  { %p1237_p1 = scmp.ne.s32.totalorder %s1355_s5, %s1236_s4  ;;  %p1240_p2 = scmp.lt.u32.totalorder %s1236_s4, %s1355_s5 }
 0x234   :  { %p1242_p3 = pnand %p1240_p2, %p1237_p1 }
 0x236   :  { %1245 = shalt.err (!%p1242_p3)
}
 0x237   :  { %880 = dma.vmem_to_hbm [thread:$0]  %s878_s7, 128, %s1355_s5, [#allocation4]  }
 0x238   :  { %1250 = dma.done.wait [#allocation4], 128  }
 0x239   :  { %1251 = vsyncadd [#allocation4], 4294967168 }
 0x23a   :  { %884 = vsyncpa [#allocation3], 1 }
 0x23b   :  { %885 = vsyncpa [#allocation6], 1 }
 0x23c   :  { %886 = vsyncpa [#allocation4], 1 }

// kernel: tpu_custom_call.1
= control target key start
LH: loop header
LB: loop body
LE: loop exit
PB: predicated region body
PF: predicated region fallthrough
CT: control target
= control target key end

     0   :  { %10 = vsyncpa [#allocation3], 0  ;;  %s1350_s0 = inlined_call_operand.hbm [shape: f32[8,1024], index: 0, kind: input, shape index: {}]   ;;  %s1351_s1 = inlined_call_operand.hbm [shape: bf16[1024,128], index: 1, kind: input, shape index: {}]   ;;  %s1352_s2 = inlined_call_operand.vmem [shape: f32[1,128], index: 2, kind: input, shape index: {}]   ;;  %s1353_s3 = inlined_call_operand.hbm [shape: bf16[128,128], index: 3, kind: input, shape index: {}]   ;;  %s1354_s4 = inlined_call_operand.vmem [shape: f32[1,128], index: 4, kind: input, shape index: {}]   ;;  %s1355_s5 = inlined_call_operand.hbm [shape: f32[8,128], index: 5, kind: output, shape index: {}]  }
   0x1   :  { %11 = vsyncpa [#allocation6], 0 }
   0x2   :  { %12 = vsyncpa [#allocation4], 0  ;;  %s1252_s18 = smov [#allocation5]   ;;  %s1158_s22 = scalar_lea.hbm %s1351_s1, 8192 }
   0x3   :  { %s28_s19 = sshll.u32 %s1252_s18, 4  ;;  %p1159_p0 = scmp.ne.s32.totalorder %s1351_s1, %s1158_s22  ;;  %s29_s19 = int_to_ptr.vmem [resolvable:$true] %s28_s19 }
   0x4   :  { %p1162_p1 = scmp.lt.u32.totalorder %s1158_s22, %s1351_s1 }
   0x6   :  { %p1164_p2 = pnand %p1162_p1, %p1159_p0 }
   0x8   :  { %1167 = shalt.err (!%p1164_p2)
}
   0x9   :  { %s1168_s27 = scalar_lea.vmem %s29_s19, 8192  ;;  %p1173_p4 = scmp.lt.s32.totalorder %s29_s19, %s29_s19 }
   0xa   :  { %p1169_p3 = scmp.ne.s32.totalorder %s29_s19, %s1168_s27  ;;  %p1174_p5 = scmp.lt.s32.totalorder %s1168_s27, %s1168_s27 }
   0xc   :  { %p1175_p6 = por %p1174_p5, %p1173_p4 }
   0xe   :  { %p1176_p7 = pnand %p1175_p6, %p1169_p3 }
  0x10   :  { %1179 = shalt.err (!%p1176_p7)
}
  0x11   :  { %s1253_s28 = smov 64   ;;  %s1254_s29 = smov 4  }
  0x12   :  { %34 = dma.hbm_to_vmem [thread:$0]  %s1351_s1, 8192, %s29_s19, [#allocation6], %s1253_s28, %s1253_s28, %s1254_s29  }
  0x13   :  { %s1255_s7 = smov [#allocation2]   ;;  %s1256_s9 = smov [#allocation7]  }
  0x14   :  { %s19_s8 = sshll.u32 %s1255_s7, 4  ;;  %s42_s10 = sshll.u32 %s1256_s9, 4  ;;  %s20_s8 = int_to_ptr.vmem [resolvable:$true] %s19_s8  ;;  %s43_s10 = int_to_ptr.vmem [resolvable:$true] %s42_s10 }
  0x15   :  { %s1180_s13 = scalar_lea.hbm %s1350_s0, 1024 }
  0x16   :  { %p1181_p8 = scmp.ne.s32.totalorder %s1350_s0, %s1180_s13  ;;  %p1184_p9 = scmp.lt.u32.totalorder %s1180_s13, %s1350_s0 }
  0x18   :  { %p1186_p10 = pnand %p1184_p9, %p1181_p8 }
  0x1a   :  { %1189 = shalt.err (!%p1186_p10)
}
  0x1b   :  { %s1190_s1 = scalar_lea.vmem %s20_s8, 1024  ;;  %p1195_p12 = scmp.lt.s32.totalorder %s20_s8, %s20_s8 }
  0x1c   :  { %p1191_p11 = scmp.ne.s32.totalorder %s20_s8, %s1190_s1  ;;  %p1196_p13 = scmp.lt.s32.totalorder %s1190_s1, %s1190_s1 }
  0x1e   :  { %p1197_p0 = por %p1196_p13, %p1195_p12 }
  0x20   :  { %p1198_p1 = pnand %p1197_p0, %p1191_p11 }
  0x22   :  { %1201 = shalt.err (!%p1198_p1)
}
  0x23   :  { %22 = dma.hbm_to_vmem [thread:$0]  %s1350_s0, 1024, %s20_s8, [#allocation3]  }
  0x24   :  { %s1202_s22 = scalar_lea.hbm %s1353_s3, 1024 }
  0x25   :  { %p1203_p2 = scmp.ne.s32.totalorder %s1353_s3, %s1202_s22  ;;  %p1206_p3 = scmp.lt.u32.totalorder %s1202_s22, %s1353_s3 }
  0x27   :  { %p1208_p4 = pnand %p1206_p3, %p1203_p2 }
  0x29   :  { %1211 = shalt.err (!%p1208_p4)
}
  0x2a   :  { %s1212_s27 = scalar_lea.vmem %s43_s10, 1024  ;;  %p1217_p6 = scmp.lt.s32.totalorder %s43_s10, %s43_s10 }
  0x2b   :  { %p1213_p5 = scmp.ne.s32.totalorder %s43_s10, %s1212_s27  ;;  %p1218_p7 = scmp.lt.s32.totalorder %s1212_s27, %s1212_s27 }
  0x2d   :  { %p1219_p8 = por %p1218_p7, %p1217_p6 }
  0x2f   :  { %p1220_p9 = pnand %p1219_p8, %p1213_p5 }
  0x31   :  { %1223 = shalt.err (!%p1220_p9)
}
  0x32   :  { %48 = dma.hbm_to_vmem [thread:$0]  %s1353_s3, 1024, %s43_s10, [#allocation6], %s1253_s28, %s1253_s28, %s1254_s29  }
  0x33   :  { %1246 = dma.done.wait [#allocation3], 1024  }
  0x34   :  { %1247 = vsyncadd [#allocation3], 4294966272 }
  0x35   :  { %1248 = dma.done.wait [#allocation6], 9216  }
  0x36   :  { %1249 = vsyncadd [#allocation6], 4294958080  ;;  %v1086_v0 = vld [vmem:[#allocation5 + $0x40] sm:$0xff]   ;;  %v1090_v4 = vld [vmem:[#allocation5 + $0x48] sm:$0xff]   ;;  %vm1258_vm0 = vmmov 0   ;;  %s1259_s6 = smov [#allocation8]  }
  0x37   :  { %v1087_v1 = vld [vmem:[#allocation5 + $0xc0] sm:$0xff]   ;;  %961 = vmatprep.subr.bf16.mxu0 %v1086_v0  ;;  %v1091_v5 = vld [vmem:[#allocation5 + $0xc8] sm:$0xff]   ;;  %v1094_v8 = vld [vmem:[#allocation5 + $0x50] sm:$0xff]   ;;  %s877_s7 = sshll.u32 %s1259_s6, 4  ;;  %s878_s7 = int_to_ptr.vmem [resolvable:$true] %s877_s7 }
  0x38   :  { %v1088_v2 = vld [vmem:[#allocation5] sm:$0xff]   ;;  %983 = vmatprep.subr.bf16.mxu1 %v1087_v1  ;;  %v1092_v6 = vld [vmem:[#allocation5 + $0x8] sm:$0xff]   ;;  %v1095_v9 = vld [vmem:[#allocation5 + $0xd0] sm:$0xff]   ;;  %s1224_s8 = scalar_lea.vmem %s878_s7, 128  ;;  %p1229_p11 = scmp.lt.s32.totalorder %s878_s7, %s878_s7 }
  0x39   :  { %v1089_v3 = vld [vmem:[#allocation5 + $0x80] sm:$0xff]   ;;  %962 = vmatpush3.bf16.msra.mxu0 %v1088_v2  ;;  %v1093_v7 = vld [vmem:[#allocation5 + $0x88] sm:$0xff]   ;;  %v1096_v10 = vld [vmem:[#allocation5 + $0x10] sm:$0xff]   ;;  %p1225_p10 = scmp.ne.s32.totalorder %s878_s7, %s1224_s8  ;;  %p1230_p12 = scmp.lt.s32.totalorder %s1224_s8, %s1224_s8 }
  0x3a   :  { %984 = vmatpush3.bf16.msra.mxu1 %v1089_v3  ;;  %963 = vmatprep.subr.bf16.mxu0 %v1090_v4  ;;  %v1097_v11 = vld [vmem:[#allocation5 + $0x90] sm:$0xff]   ;;  %v1098_v12 = vld [vmem:[#allocation5 + $0x58] sm:$0xff]   ;;  %v1102_v16 = vld [vmem:[#allocation5 + $0x60] sm:$0xff]  }
  0x3b   :  { %985 = vmatprep.subr.bf16.mxu1 %v1091_v5  ;;  %v1099_v13 = vld [vmem:[#allocation5 + $0xd8] sm:$0xff]   ;;  %v1103_v17 = vld [vmem:[#allocation5 + $0xe0] sm:$0xff]   ;;  %v1106_v20 = vld [vmem:[#allocation5 + $0x68] sm:$0xff]   ;;  %p1231_p13 = por %p1230_p12, %p1229_p11 }
  0x3c   :  { %v1100_v14 = vld [vmem:[#allocation5 + $0x18] sm:$0xff]   ;;  %v1104_v18 = vld [vmem:[#allocation5 + $0x20] sm:$0xff]   ;;  %v1107_v21 = vld [vmem:[#allocation5 + $0xe8] sm:$0xff]  }
  0x3d   :  { %964 = vmatpush3.bf16.msra.mxu0 %v1092_v6  ;;  %v1101_v15 = vld [vmem:[#allocation5 + $0x98] sm:$0xff]   ;;  %v1105_v19 = vld [vmem:[#allocation5 + $0xa0] sm:$0xff]   ;;  %v1108_v22 = vld [vmem:[#allocation5 + $0x28] sm:$0xff]   ;;  %p1232_p0 = pnand %p1231_p13, %p1225_p10 }
  0x3e   :  { %986 = vmatpush3.bf16.msra.mxu1 %v1093_v7  ;;  %965 = vmatprep.subr.bf16.mxu0 %v1094_v8  ;;  %v1109_v23 = vld [vmem:[#allocation5 + $0xa8] sm:$0xff]   ;;  %v1110_v24 = vld [vmem:[#allocation5 + $0x70] sm:$0xff]   ;;  %v1114_v28 = vld [vmem:[#allocation5 + $0x78] sm:$0xff]  }
  0x3f   :  { %987 = vmatprep.subr.bf16.mxu1 %v1095_v9  ;;  %v1111_v25 = vld [vmem:[#allocation5 + $0xf0] sm:$0xff]   ;;  %v1115_v29 = vld [vmem:[#allocation5 + $0xf8] sm:$0xff]   ;;  %v62_v32 = vld [vmem:[#allocation2 + $0x8] sm:$0xff] }
  0x40   :  { %v1112_v26 = vld [vmem:[#allocation5 + $0x30] sm:$0xff]   ;;  %v1116_v30 = vld [vmem:[#allocation5 + $0x38] sm:$0xff]   ;;  %v61_v34 = vld [vmem:[#allocation2] sm:$0xff]  ;;  %v70_v35 = vpack.c.bf16 %v62_v32, %v62_v32 }
  0x41   :  { %966 = vmatpush3.bf16.msra.mxu0 %v1096_v10  ;;  %v1113_v27 = vld [vmem:[#allocation5 + $0xb0] sm:$0xff]   ;;  %v1117_v31 = vld [vmem:[#allocation5 + $0xb8] sm:$0xff]   ;;  %v69_v37 = vpack.c.bf16 %v61_v34, %v61_v34  ;;  %v1118_v40 = vld [vmem:[#allocation5 + $0x140] sm:$0xff]  }
  0x42   :  { %988 = vmatpush3.bf16.msra.mxu1 %v1097_v11  ;;  %967 = vmatprep.subr.bf16.mxu0 %v1098_v12  ;;  %v64_v33 = vld [vmem:[#allocation2 + $0x18] sm:$0xff]  ;;  %v63_v38 = vld [vmem:[#allocation2 + $0x10] sm:$0xff]  ;;  %v1119_v41 = vld [vmem:[#allocation5 + $0x1c0] sm:$0xff]  }
  0x43   :  { %989 = vmatprep.subr.bf16.mxu1 %v1099_v13  ;;  %v72_v36 = vpack.c.bf16 %v64_v33, %v64_v33  ;;  %v71_v39 = vpack.c.bf16 %v63_v38, %v63_v38  ;;  %628 = vmatprep.mubr.bf16.mxu0 %v70_v35  ;;  %v1120_v42 = vld [vmem:[#allocation5 + $0x100] sm:$0xff]   ;;  %v1122_v44 = vld [vmem:[#allocation5 + $0x148] sm:$0xff]   ;;  %v1126_v48 = vld [vmem:[#allocation5 + $0x150] sm:$0xff]  }
  0x44   :  { %v1121_v43 = vld [vmem:[#allocation5 + $0x180] sm:$0xff]   ;;  %v1123_v45 = vld [vmem:[#allocation5 + $0x1c8] sm:$0xff]   ;;  %v1127_v49 = vld [vmem:[#allocation5 + $0x1d0] sm:$0xff]  }
  0x45   :  { %968 = vmatpush3.bf16.msra.mxu0 %v1100_v14  ;;  %668 = vmatprep.mubr.bf16.mxu1 %v72_v36  ;;  %v1124_v46 = vld [vmem:[#allocation5 + $0x108] sm:$0xff]   ;;  %v1128_v50 = vld [vmem:[#allocation5 + $0x110] sm:$0xff]   ;;  %v1130_v52 = vld [vmem:[#allocation5 + $0x158] sm:$0xff]  }
  0x46   :  { %990 = vmatpush3.bf16.msra.mxu1 %v1101_v15  ;;  %969 = vmatprep.subr.bf16.mxu0 %v1102_v16  ;;  %v1125_v47 = vld [vmem:[#allocation5 + $0x188] sm:$0xff]   ;;  %v1129_v51 = vld [vmem:[#allocation5 + $0x190] sm:$0xff]   ;;  %v1131_v53 = vld [vmem:[#allocation5 + $0x1d8] sm:$0xff]  }
  0x47   :  { %991 = vmatprep.subr.bf16.mxu1 %v1103_v17  ;;  %v1132_v54 = vld [vmem:[#allocation5 + $0x118] sm:$0xff]   ;;  %v1134_v56 = vld [vmem:[#allocation5 + $0x160] sm:$0xff]   ;;  %v1138_v60 = vld [vmem:[#allocation5 + $0x168] sm:$0xff]   ;;  %v1257_v17 = vmov 0.0  }
  0x48   :  { %v1133_v55 = vld [vmem:[#allocation5 + $0x198] sm:$0xff]   ;;  %v1135_v57 = vld [vmem:[#allocation5 + $0x1e0] sm:$0xff]   ;;  %v1139_v61 = vld [vmem:[#allocation5 + $0x1e8] sm:$0xff]  }
  0x49   :  { %970 = vmatpush3.bf16.msra.mxu0 %v1104_v18  ;;  %v1136_v58 = vld [vmem:[#allocation5 + $0x120] sm:$0xff]   ;;  %v1140_v62 = vld [vmem:[#allocation5 + $0x128] sm:$0xff]   ;;  %v1142_v0 = vld [vmem:[#allocation5 + $0x170] sm:$0xff]  }
  0x4a   :  { %992 = vmatpush3.bf16.msra.mxu1 %v1105_v19  ;;  %971 = vmatprep.subr.bf16.mxu0 %v1106_v20  ;;  %v1137_v59 = vld [vmem:[#allocation5 + $0x1a0] sm:$0xff]   ;;  %v1141_v63 = vld [vmem:[#allocation5 + $0x1a8] sm:$0xff]   ;;  %v1143_v1 = vld [vmem:[#allocation5 + $0x1f0] sm:$0xff]  }
  0x4b   :  { %993 = vmatprep.subr.bf16.mxu1 %v1107_v21  ;;  %v1144_v2 = vld [vmem:[#allocation5 + $0x130] sm:$0xff]   ;;  %v1146_v4 = vld [vmem:[#allocation5 + $0x178] sm:$0xff]   ;;  %v66_v8 = vld [vmem:[#allocation2 + $0x28] sm:$0xff] }
  0x4c   :  { %v1145_v3 = vld [vmem:[#allocation5 + $0x1b0] sm:$0xff]   ;;  %v1147_v5 = vld [vmem:[#allocation5 + $0x1f8] sm:$0xff]   ;;  %v74_v10 = vpack.c.bf16 %v66_v8, %v66_v8  ;;  %v65_v12 = vld [vmem:[#allocation2 + $0x20] sm:$0xff] }
  0x4d   :  { %972 = vmatpush3.bf16.msra.mxu0 %v1108_v22  ;;  %v1148_v6 = vld [vmem:[#allocation5 + $0x138] sm:$0xff]   ;;  %v67_v13 = vld [vmem:[#allocation2 + $0x30] sm:$0xff]  ;;  %v73_v14 = vpack.c.bf16 %v65_v12, %v65_v12  ;;  %v1150_v16 = vld [vmem:[#allocation7] sm:$0xff]  }
  0x4e   :  { %994 = vmatpush3.bf16.msra.mxu1 %v1109_v23  ;;  %973 = vmatprep.subr.bf16.mxu0 %v1110_v24  ;;  %v1149_v7 = vld [vmem:[#allocation5 + $0x1b8] sm:$0xff]   ;;  %v75_v15 = vpack.c.bf16 %v67_v13, %v67_v13  ;;  %v1151_v18 = vld [vmem:[#allocation7 + $0x8] sm:$0xff]   ;;  %v1152_v19 = vld [vmem:[#allocation7 + $0x10] sm:$0xff]  }
  0x4f   :  { %995 = vmatprep.subr.bf16.mxu1 %v1111_v25  ;;  %v68_v9 = vld [vmem:[#allocation2 + $0x38] sm:$0xff]  ;;  %v1154_v21 = vld [vmem:[#allocation7 + $0x20] sm:$0xff]   ;;  %v1155_v22 = vld [vmem:[#allocation7 + $0x28] sm:$0xff]  }
  0x50   :  { %v76_v11 = vpack.c.bf16 %v68_v9, %v68_v9  ;;  %v1153_v20 = vld [vmem:[#allocation7 + $0x18] sm:$0xff]   ;;  %v1156_v23 = vld [vmem:[#allocation7 + $0x30] sm:$0xff]  }
  0x51   :  { %974 = vmatpush3.bf16.msra.mxu0 %v1112_v26  ;;  %v1157_v24 = vld [vmem:[#allocation7 + $0x38] sm:$0xff]  }
  0x52   :  { %996 = vmatpush3.bf16.msra.mxu1 %v1113_v27  ;;  %975 = vmatprep.subr.bf16.mxu0 %v1114_v28  ;;  %v887_v27 = vld [vmem:[%s1352_s2] ss:$0 sm:$0xff] }
  0x53   :  { %997 = vmatprep.subr.bf16.mxu1 %v1115_v29 }
  0x55   :  { %976 = vmatpush3.bf16.msra.mxu0 %v1116_v30 }
  0x56   :  { %998 = vmatpush3.bf16.msra.mxu1 %v1117_v31  ;;  %1005 = vmatprep.subr.bf16.mxu0 %v1118_v40 }
  0x57   :  { %1027 = vmatprep.subr.bf16.mxu1 %v1119_v41 }
  0x58   :  { %629 = vmatmul.mubr.bf16.vlgmr.msra.gmra.mrb[0].mxu0 %v69_v37 }
  0x59   :  { %669 = vmatmul.mubr.bf16.vlgmr.msra.gmra.mrb[0].mxu1 %v71_v39  ;;  %1006 = vmatpush3.bf16.msra.mxu0 %v1120_v42 }
  0x5a   :  { %1028 = vmatpush3.bf16.msra.mxu1 %v1121_v43  ;;  %1007 = vmatprep.subr.bf16.mxu0 %v1122_v44 }
  0x5b   :  { %1029 = vmatprep.subr.bf16.mxu1 %v1123_v45  ;;  %708 = vmatprep.mubr.bf16.mxu0 %v74_v10 }
  0x5c   :  { %748 = vmatprep.mubr.bf16.mxu1 %v76_v11 }
  0x5d   :  { %1008 = vmatpush3.bf16.msra.mxu0 %v1124_v46 }
  0x5e   :  { %1030 = vmatpush3.bf16.msra.mxu1 %v1125_v47  ;;  %1009 = vmatprep.subr.bf16.mxu0 %v1126_v48 }
  0x5f   :  { %1031 = vmatprep.subr.bf16.mxu1 %v1127_v49 }
  0x61   :  { %1010 = vmatpush3.bf16.msra.mxu0 %v1128_v50 }
  0x62   :  { %1032 = vmatpush3.bf16.msra.mxu1 %v1129_v51  ;;  %1011 = vmatprep.subr.bf16.mxu0 %v1130_v52  ;;  %v952_v52 = vld [vmem:[%s1354_s4] ss:$0 sm:$0xff] }
  0x63   :  { %1033 = vmatprep.subr.bf16.mxu1 %v1131_v53 }
  0x65   :  { %1012 = vmatpush3.bf16.msra.mxu0 %v1132_v54 }
  0x66   :  { %1034 = vmatpush3.bf16.msra.mxu1 %v1133_v55  ;;  %1013 = vmatprep.subr.bf16.mxu0 %v1134_v56 }
  0x67   :  { %1035 = vmatprep.subr.bf16.mxu1 %v1135_v57 }
  0x69   :  { %1014 = vmatpush3.bf16.msra.mxu0 %v1136_v58 }
  0x6a   :  { %1036 = vmatpush3.bf16.msra.mxu1 %v1137_v59  ;;  %1015 = vmatprep.subr.bf16.mxu0 %v1138_v60 }
  0x6b   :  { %1037 = vmatprep.subr.bf16.mxu1 %v1139_v61 }
  0x6d   :  { %1016 = vmatpush3.bf16.msra.mxu0 %v1140_v62 }
  0x6e   :  { %1038 = vmatpush3.bf16.msra.mxu1 %v1141_v63  ;;  %1017 = vmatprep.subr.bf16.mxu0 %v1142_v0 }
  0x6f   :  { %1039 = vmatprep.subr.bf16.mxu1 %v1143_v1 }
  0x71   :  { %1018 = vmatpush3.bf16.msra.mxu0 %v1144_v2 }
  0x72   :  { %1040 = vmatpush3.bf16.msra.mxu1 %v1145_v3  ;;  %1019 = vmatprep.subr.bf16.mxu0 %v1146_v4 }
  0x73   :  { %1041 = vmatprep.subr.bf16.mxu1 %v1147_v5 }
  0x75   :  { %1020 = vmatpush3.bf16.msra.mxu0 %v1148_v6 }
  0x76   :  { %1042 = vmatpush3.bf16.msra.mxu1 %v1149_v7  ;;  %1058 = vmatprep.subr.bf16.mxu0 %v1257_v17 }
  0x78   :  { %709 = vmatmul.mubr.bf16.vlgmr.msra.gmra.mrb[4].mxu0 %v73_v14 }
  0x79   :  { %749 = vmatmul.mubr.bf16.vlgmr.msra.gmra.mrb[4].mxu1 %v75_v15  ;;  %1059 = vmatpush3.bf16.msra.mxu0 %v1150_v16 }
  0x7a   :  { %1060 = vmatprep.subr.bf16.mxu0 %v1257_v17  ;;  %1074 = vmatprep.mubr.msk.bf16.mxu0 %vm1258_vm0, %v1257_v17 }
  0x7d   :  { %1061 = vmatpush3.bf16.msra.mxu0 %v1151_v18 }
  0x7e   :  { %1062 = vmatprep.subr.bf16.mxu0 %v1257_v17 }
  0x81   :  { %1063 = vmatpush3.bf16.msra.mxu0 %v1152_v19 }
  0x82   :  { %1064 = vmatprep.subr.bf16.mxu0 %v1257_v17 }
  0x85   :  { %1065 = vmatpush3.bf16.msra.mxu0 %v1153_v20 }
  0x86   :  { %1066 = vmatprep.subr.bf16.mxu0 %v1257_v17 }
  0x89   :  { %1067 = vmatpush3.bf16.msra.mxu0 %v1154_v21 }
  0x8a   :  { %1068 = vmatprep.subr.bf16.mxu0 %v1257_v17 }
  0x8d   :  { %1069 = vmatpush3.bf16.msra.mxu0 %v1155_v22 }
  0x8e   :  { %1070 = vmatprep.subr.bf16.mxu0 %v1257_v17 }
  0x91   :  { %1071 = vmatpush3.bf16.msra.mxu0 %v1156_v23 }
  0x92   :  { %1072 = vmatprep.subr.bf16.mxu0 %v1257_v17 }
  0x95   :  { %1073 = vmatpush3.bf16.msra.mxu0 %v1157_v24 }
 0x12b   :  { %v977_v25 = vpop.f32.mrb[0].mxu0 }
 0x12c   :  { %v999_v26 = vpop.f32.mrb[0].mxu1  ;;  %v978_v28 = vpop.f32.mrb[1].mxu0 }
 0x12d   :  { %v1000_v29 = vpop.f32.mrb[1].mxu1  ;;  %v979_v30 = vadd.f32 %v978_v28, %v977_v25  ;;  %v980_v32 = vpop.f32.mrb[2].mxu0 }
 0x12e   :  { %v1001_v31 = vadd.f32 %v1000_v29, %v999_v26  ;;  %v1002_v33 = vpop.f32.mrb[2].mxu1  ;;  %v981_v34 = vpop.f32.mrb[3].mxu0 }
 0x12f   :  { %v1003_v35 = vpop.f32.mrb[3].mxu1  ;;  %v631_v36 = vadd.f32 %v979_v30, %v887_v27 }
 0x131   :  { %v671_v37 = vadd.f32 %v1001_v31, %v631_v36 }
 0x14b   :  { %v1021_v38 = vpop.f32.mrb[4].mxu0 }
 0x14c   :  { %v1043_v39 = vpop.f32.mrb[4].mxu1  ;;  %v1022_v40 = vpop.f32.mrb[5].mxu0 }
 0x14d   :  { %v1023_v41 = vadd.f32 %v1022_v40, %v1021_v38  ;;  %v1044_v42 = vpop.f32.mrb[5].mxu1  ;;  %v1024_v43 = vpop.f32.mrb[6].mxu0 }
 0x14e   :  { %v1045_v44 = vadd.f32 %v1044_v42, %v1043_v39  ;;  %v1046_v45 = vpop.f32.mrb[6].mxu1  ;;  %v1025_v46 = vpop.f32.mrb[7].mxu0 }
 0x14f   :  { %v711_v47 = vadd.f32 %v1023_v41, %v671_v37  ;;  %v1047_v48 = vpop.f32.mrb[7].mxu1 }
 0x151   :  { %v751_v49 = vadd.f32 %v1045_v44, %v711_v47 }
 0x153   :  { %v756_v50 = vmax.f32 %v751_v49, 0.0 }
 0x155   :  { %v757_v51 = vpack.c.bf16 %v756_v50, %v756_v50 }
 0x157   :  { %1075 = vmatmul.mubr.bf16.vlgmr.msra.gmra.mrb[8].mxu0 %v757_v51 }
 0x22a   :  { %v863_v53 = vpop.f32.mrb[8].mxu0 }
 0x22b   :  { %v864_v54 = vadd.f32 %v952_v52, %v863_v53  ;;  %v1076_v55 = vpop.f32.mrb[9].mxu0 }
 0x22c   :  { %v866_v56 = vpop.f32.mrb[10].mxu0 }
 0x22d   :  { %v869_v57 = vmax.f32 %v864_v54, 0.0  ;;  %v1077_v58 = vpop.f32.mrb[11].mxu0 }
 0x22f   :  { %870 = vst [vmem:[#allocation8] sm:$0xff] %v869_v57 }
 0x230   :  { %1235 = shalt.err (!%p1232_p0)
}
 0x231   :  { %s1236_s4 = scalar_lea.hbm %s1355_s5, 128 }
 0x232   :  { %p1237_p1 = scmp.ne.s32.totalorder %s1355_s5, %s1236_s4  ;;  %p1240_p2 = scmp.lt.u32.totalorder %s1236_s4, %s1355_s5 }
 0x234   :  { %p1242_p3 = pnand %p1240_p2, %p1237_p1 }
 0x236   :  { %1245 = shalt.err (!%p1242_p3)
}
 0x237   :  { %880 = dma.vmem_to_hbm [thread:$0]  %s878_s7, 128, %s1355_s5, [#allocation4]  }
 0x238   :  { %1250 = dma.done.wait [#allocation4], 128  }
 0x239   :  { %1251 = vsyncadd [#allocation4], 4294967168 }
 0x23a   :  { %884 = vsyncpa [#allocation3], 1 }
 0x23b   :  { %885 = vsyncpa [#allocation6], 1 }
 0x23c   :  { %886 = vsyncpa [#allocation4], 1 }

</bundles_post_ra>
